<compile_context>
chip_gen: v7x
topology: tpu7x:2x2x1
jax: 0.10.0
libtpu: 0.0.40
codegen_flags: <defaults>
</compile_context>

<pallas_src>
import functools

import jax
import jax.numpy as jnp
from jax.experimental import pallas as pl
from jax.experimental.pallas import tpu as pltpu


def _round_up(x, m):
    return -(-int(x) // int(m)) * int(m)


def _focal_loss_kernel(x_ref, t_ref, out_ref, acc_ref, *,
                       alpha, gamma, total_n, tile_n, needs_mask):
    i = pl.program_id(0)

    @pl.when(i == 0)
    def _():
        acc_ref[...] = jnp.zeros_like(acc_ref)

    x = x_ref[...].astype(jnp.float32)          # (tile_n, C) logits tile (f32)
    t = t_ref[...]                              # (tile_n, 1) int32 targets

    # Numerically-stable log-sum-exp per row; `x - m` feeds only the exp-sum.
    m = jnp.max(x, axis=-1, keepdims=True)                       # (tile_n, 1)
    lse = jnp.log(jnp.sum(jnp.exp(x - m), axis=-1, keepdims=True))

    # Gather the target's raw logit via a (1, C) iota broadcast against the
    # (tile_n, 1) targets; no tile-sized iota and no second shifted tile.
    col = jax.lax.broadcasted_iota(jnp.int32, (1, x.shape[-1]), 1)
    x_t = jnp.sum(jnp.where(col == t, x, 0.0), axis=-1, keepdims=True)
    logpt = (x_t - m) - lse                                       # (tile_n, 1)

    ce = -logpt                                  # per-sample cross entropy
    pt = jnp.exp(logpt)
    base = jnp.maximum(1.0 - pt, 0.0)            # clamp: avoid pow(neg, float)

    # Specialize (1 - pt)**gamma to pure VPU multiplies for small integer gamma.
    g_int = int(gamma)
    if float(gamma) == float(g_int) and 0 <= g_int <= 8:
        if g_int == 0:
            pow_term = jnp.ones_like(base)
        else:
            pow_term = base
            for _ in range(g_int - 1):
                pow_term = pow_term * base
    else:
        pow_term = jnp.power(base, gamma)

    focal = alpha * pow_term * ce                # (tile_n, 1)

    # Mask rows past the end of the array (partial last block). Compiled in
    # only when N is not tile-aligned; cheap ((tile_n, 1) ops) otherwise too.
    if needs_mask:
        rows = i * tile_n + jax.lax.broadcasted_iota(jnp.int32, (tile_n, 1), 0)
        focal = jnp.where(rows < total_n, focal, 0.0)

    acc_ref[...] += focal

    @pl.when(i == pl.num_programs(0) - 1)
    def _():
        out_ref[0, 0] = jnp.sum(acc_ref[...])    # single cross-sublane reduce


def focal_loss(logits, targets, alpha=1.0, gamma=2.0, tile_n=None,
               target_step_bytes=2 * 1024 * 1024):
    """Pallas implementation of FocalLoss.forward (returns a scalar)."""
    N, C = logits.shape
    itemsize = jnp.dtype(logits.dtype).itemsize
    # Dtype-aware sublane multiple: 8 for f32, 16 for bf16, 32 for int8.
    sub = max(8, 32 // itemsize)

    # Generation-aware VMEM capacity (falls back to the v7x-safe 64 MiB).
    try:
        info = pltpu.get_tpu_info()
        vmem_cap = int(getattr(info, "vmem_capacity_bytes", 0)) or (64 << 20)
    except Exception:
        vmem_cap = 64 << 20

    # Per-row VMEM cost: double-buffered input tile plus ~3 tile-sized f32
    # intermediates (f32 cast, exp(x - m), gather select) inside the body.
    per_row = C * (2 * itemsize + 3 * 4)
    vmem_budget = int(vmem_cap * 0.4)
    max_tile = max(sub, (vmem_budget // per_row) // sub * sub)

    if tile_n is None:
        # Size the step by streamed bytes (~target_step_bytes of logits per
        # grid step), with a 256-row floor for tiny-C inputs.
        tile_n = max(256, pl.cdiv(target_step_bytes, C * itemsize))
    tile_n = _round_up(tile_n, sub)
    tile_n = min(tile_n, max_tile, _round_up(N, sub))
    tile_n = max(tile_n, sub)

    n_blocks = pl.cdiv(N, tile_n)
    needs_mask = (n_blocks * tile_n != N)

    targets_2d = targets.astype(jnp.int32).reshape(N, 1)

    kernel = functools.partial(
        _focal_loss_kernel,
        alpha=float(alpha), gamma=float(gamma), total_n=N,
        tile_n=tile_n, needs_mask=needs_mask,
    )

    total = pl.pallas_call(
        kernel,
        out_shape=jax.ShapeDtypeStruct((1, 1), jnp.float32),
        grid_spec=pltpu.PrefetchScalarGridSpec(
            num_scalar_prefetch=0,
            grid=(n_blocks,),
            in_specs=[
                pl.BlockSpec((tile_n, C), lambda i: (i, 0)),
                pl.BlockSpec((tile_n, 1), lambda i: (i, 0)),
            ],
            out_specs=pl.BlockSpec(
                (1, 1), lambda i: (0, 0), memory_space=pltpu.SMEM
            ),
            scratch_shapes=[pltpu.VMEM((tile_n, 1), jnp.float32)],
        ),
        compiler_params=pltpu.CompilerParams(
            dimension_semantics=("arbitrary",),
            vmem_limit_bytes=int(vmem_cap * 0.7),
        ),
    )(logits, targets_2d)

    return total[0, 0] / jnp.float32(N)


def focal_loss_ref(logits, targets, alpha=1.0, gamma=2.0):
    """Pure-JAX reference matching the torch module's semantics."""
    logp = jax.nn.log_softmax(logits.astype(jnp.float32), axis=-1)
    logpt = jnp.take_along_axis(
        logp, targets[:, None].astype(jnp.int32), axis=-1)[:, 0]
    ce = -logpt
    pt = jnp.exp(-ce)
    return jnp.mean(alpha * (1.0 - pt) ** gamma * ce)


if __name__ == "__main__":
    key = jax.random.PRNGKey(0)
    k1, k2, k3, k4, k5, k6 = jax.random.split(key, 6)

    # Case 1: small, even shape (N=16, C=32), default (byte-sized) tiling.
    N, C = 16, 32
    logits = jax.random.normal(k1, (N, C), dtype=jnp.float32)
    targets = jax.random.randint(k2, (N,), 0, C, dtype=jnp.int32)
    out = jax.block_until_ready(focal_loss(logits, targets, alpha=1.0, gamma=2.0))
    ref = focal_loss_ref(logits, targets, alpha=1.0, gamma=2.0)
    assert jnp.allclose(out, ref, rtol=1e-5, atol=1e-6), (out, ref)

    # Case 2: ragged N (exercises partial last block + masking, no padding).
    N2, C2 = 50, 40
    logits2 = jax.random.normal(k3, (N2, C2), dtype=jnp.float32)
    targets2 = jax.random.randint(k4, (N2,), 0, C2, dtype=jnp.int32)
    out2 = jax.block_until_ready(
        focal_loss(logits2, targets2, alpha=0.5, gamma=2.0, tile_n=8))
    ref2 = focal_loss_ref(logits2, targets2, alpha=0.5, gamma=2.0)
    assert jnp.allclose(out2, ref2, rtol=1e-5, atol=1e-6), (out2, ref2)

    # Case 3: bf16 logits (exercises the 16-row sublane rounding path and
    # multi-step accumulation), streamed as bf16, promoted to f32 in-kernel.
    N3, C3 = 64, 24
    logits3 = jax.random.normal(k5, (N3, C3), dtype=jnp.bfloat16)
    targets3 = jax.random.randint(k6, (N3,), 0, C3, dtype=jnp.int32)
    out3 = jax.block_until_ready(
        focal_loss(logits3, targets3, alpha=1.0, gamma=2.0, tile_n=16))
    ref3 = focal_loss_ref(logits3, targets3, alpha=1.0, gamma=2.0)
    assert jnp.allclose(out3, ref3, rtol=1e-4, atol=1e-5), (out3, ref3)

    print("KERNEL_OK")
</pallas_src>

<mosaic_0001>
module attributes {stable_mosaic.version = 11 : i64} {
  func.func @_focal_loss_kernel(%arg0: i32, %arg1: memref<16x32xf32, #tpu.memory_space<vmem>>, %arg2: memref<16x1xi32, #tpu.memory_space<vmem>>, %arg3: memref<1x1xf32, #tpu.memory_space<smem>>, %arg4: memref<16x1xf32, #tpu.memory_space<vmem>>) attributes {dimension_semantics = [#tpu.dimension_semantics<arbitrary>], iteration_bounds = array<i64: 1>, scalar_prefetch = 0 : i64, scratch_operands = 1 : i64, tpu.core_type = #tpu.core_type<tc>, window_params = [{transform_indices = @transform_0, window_bounds = array<i64: 16, 32>}, {transform_indices = @transform_1, window_bounds = array<i64: 16, 1>}, {transform_indices = @transform_2, window_bounds = array<i64: 1, 1>}]} {
    %c0_i32 = arith.constant 0 : i32
    %0 = arith.cmpi eq, %arg0, %c0_i32 : i32
    %1 = arith.extui %0 : i1 to i32
    %c0_i32_0 = arith.constant 0 : i32
    %2 = arith.cmpi ne, %1, %c0_i32_0 : i32
    scf.if %2 {
      %cst_17 = arith.constant 0.000000e+00 : f32
      %40 = vector.broadcast %cst_17 : f32 to vector<16x1xf32>
      %c0_18 = arith.constant 0 : index
      %c0_19 = arith.constant 0 : index
      %41 = vector.load %arg4[%c0_18, %c0_19] : memref<16x1xf32, #tpu.memory_space<vmem>>, vector<16x1xf32>
      tpu.vector_store %arg4[%c0_18, %c0_19], %40 {strides = array<i32>} : memref<16x1xf32, #tpu.memory_space<vmem>>, vector<16x1xf32>,
    } else {
    }
    %c0 = arith.constant 0 : index
    %c0_1 = arith.constant 0 : index
    %3 = vector.load %arg1[%c0, %c0_1] : memref<16x32xf32, #tpu.memory_space<vmem>>, vector<16x32xf32>
    %c0_2 = arith.constant 0 : index
    %c0_3 = arith.constant 0 : index
    %4 = vector.load %arg2[%c0_2, %c0_3] : memref<16x1xi32, #tpu.memory_space<vmem>>, vector<16x1xi32>
    %cst = arith.constant dense<0xFF800000> : vector<16xf32>
    %5 = vector.multi_reduction <maximumf>, %3, %cst [1] : vector<16x32xf32> to vector<16xf32>
    %6 = vector.shape_cast %5 : vector<16xf32> to vector<16x1xf32>
    %7 = vector.broadcast %6 : vector<16x1xf32> to vector<16x32xf32>
    %8 = arith.subf %3, %7 : vector<16x32xf32>
    %9 = math.exp %8 : vector<16x32xf32>
    %cst_4 = arith.constant dense<0.000000e+00> : vector<16xf32>
    %10 = vector.multi_reduction <add>, %9, %cst_4 [1] : vector<16x32xf32> to vector<16xf32>
    %11 = vector.shape_cast %10 : vector<16xf32> to vector<16x1xf32>
    %12 = math.log %11 : vector<16x1xf32>
    %13 = tpu.iota {dimensions = array<i32: 1>} : vector<1x32xi32>
    %14 = vector.broadcast %13 : vector<1x32xi32> to vector<16x32xi32>
    %15 = vector.broadcast %4 : vector<16x1xi32> to vector<16x32xi32>
    %16 = arith.cmpi eq, %14, %15 : vector<16x32xi32>
    %cst_5 = arith.constant 0.000000e+00 : f32
    %17 = vector.broadcast %cst_5 : f32 to vector<16x32xf32>
    %18 = arith.select %16, %3, %17 : vector<16x32xi1>, vector<16x32xf32>
    %cst_6 = arith.constant dense<0.000000e+00> : vector<16xf32>
    %19 = vector.multi_reduction <add>, %18, %cst_6 [1] : vector<16x32xf32> to vector<16xf32>
    %20 = vector.shape_cast %19 : vector<16xf32> to vector<16x1xf32>
    %21 = arith.subf %20, %6 : vector<16x1xf32>
    %22 = arith.subf %21, %12 : vector<16x1xf32>
    %cst_7 = arith.constant 0.000000e+00 : f32
    %23 = vector.broadcast %cst_7 : f32 to vector<16x1xf32>
    %24 = arith.subf %23, %22 : vector<16x1xf32>
    %25 = math.exp %22 : vector<16x1xf32>
    %cst_8 = arith.constant 1.000000e+00 : f32
    %26 = vector.broadcast %cst_8 : f32 to vector<16x1xf32>
    %27 = arith.subf %26, %25 : vector<16x1xf32>
    %cst_9 = arith.constant 0.000000e+00 : f32
    %28 = vector.broadcast %cst_9 : f32 to vector<16x1xf32>
    %29 = arith.maximumf %27, %28 : vector<16x1xf32>
    %30 = arith.mulf %29, %29 : vector<16x1xf32>
    %cst_10 = arith.constant 1.000000e+00 : f32
    %31 = vector.broadcast %cst_10 : f32 to vector<16x1xf32>
    %32 = arith.mulf %31, %30 : vector<16x1xf32>
    %33 = arith.mulf %32, %24 : vector<16x1xf32>
    %c0_11 = arith.constant 0 : index
    %c0_12 = arith.constant 0 : index
    %34 = vector.load %arg4[%c0_11, %c0_12] : memref<16x1xf32, #tpu.memory_space<vmem>>, vector<16x1xf32>
    %35 = arith.addf %34, %33 : vector<16x1xf32>
    %c0_13 = arith.constant 0 : index
    %c0_14 = arith.constant 0 : index
    %36 = vector.load %arg4[%c0_13, %c0_14] : memref<16x1xf32, #tpu.memory_space<vmem>>, vector<16x1xf32>
    tpu.vector_store %arg4[%c0_13, %c0_14], %35 {strides = array<i32>} : memref<16x1xf32, #tpu.memory_space<vmem>>, vector<16x1xf32>,
    %c0_i32_15 = arith.constant 0 : i32
    %37 = arith.cmpi eq, %arg0, %c0_i32_15 : i32
    %38 = arith.extui %37 : i1 to i32
    %c0_i32_16 = arith.constant 0 : i32
    %39 = arith.cmpi ne, %38, %c0_i32_16 : i32
    scf.if %39 {
      %c0_17 = arith.constant 0 : index
      %c0_18 = arith.constant 0 : index
      %40 = vector.load %arg4[%c0_17, %c0_18] : memref<16x1xf32, #tpu.memory_space<vmem>>, vector<16x1xf32>
      %41 = vector.shape_cast %40 : vector<16x1xf32> to vector<1x16x1xf32>
      %cst_19 = arith.constant dense<0.000000e+00> : vector<1xf32>
      %42 = vector.multi_reduction <add>, %41, %cst_19 [1, 2] : vector<1x16x1xf32> to vector<1xf32>
      %43 = vector.shape_cast %42 : vector<1xf32> to vector<1x1x1xf32>
      %44 = vector.extract %43[0, 0, 0] : f32 from vector<1x1x1xf32>
      %c0_20 = arith.constant 0 : index
      %c0_21 = arith.constant 0 : index
      %45 = memref.load %arg3[%c0_20, %c0_21] : memref<1x1xf32, #tpu.memory_space<smem>>
      memref.store %44, %arg3[%c0_20, %c0_21] : memref<1x1xf32, #tpu.memory_space<smem>>
    } else {
    }
    return
  }
  func.func @transform_0(%arg0: i32) -> (i32, i32) {
    %c0_i32 = arith.constant 0 : i32
    %c0_i32_0 = arith.constant 0 : i32
    return %arg0, %c0_i32 : i32, i32
  }
  func.func @transform_1(%arg0: i32) -> (i32, i32) {
    %c0_i32 = arith.constant 0 : i32
    %c0_i32_0 = arith.constant 0 : i32
    return %arg0, %c0_i32 : i32, i32
  }
  func.func @transform_2(%arg0: i32) -> (i32, i32) {
    %c0_i32 = arith.constant 0 : i32
    %c0_i32_0 = arith.constant 0 : i32
    %c0_i32_1 = arith.constant 0 : i32
    return %c0_i32, %c0_i32_0 : i32, i32
  }
}

</mosaic_0001>

<bundles_post_ra>
// kernel: tpu_custom_call.1
= control target key start
LH: loop header
LB: loop body
LE: loop exit
PB: predicated region body
PF: predicated region fallthrough
CT: control target
= control target key end

     0   :  { %vm23_vm0 = vcmask 261120   ;;  %v152_v4 = vmov 0   ;;  %s206_s0 = inlined_call_operand.vmem [shape: f32[16,32], index: 0, kind: input, shape index: {}]   ;;  %s207_s1 = inlined_call_operand.vmem [shape: s32[16,1], index: 1, kind: input, shape index: {}]   ;;  %s208_s2 = inlined_call_operand.hbm [shape: f32[1,1], index: 2, kind: output, shape index: {}]  }
   0x1   :  { %v19_v0 = vld [vmem:[%s206_s0] sm:$0xff]  ;;  %v20_v1 = vld [vmem:[%s206_s0 + $0x8] sm:$0xff]  ;;  %126 = vset.pattern.permute.xlu1 %v152_v4  ;;  %127 = vset.pattern.permute.xlu0 %v152_v4 }
   0x2   :  { %v21_v2 = vld [vmem:[%s207_s1] sm:$0xff]  ;;  %v24_v3 = vsel %vm23_vm0, %v19_v0, -inf }
   0x3   :  { %7 = vsyncpa [#allocation4], 0  ;;  %25 = vmax.xlane.f32.xlu0 %v24_v3  ;;  %49 = vperm.xlu1 %126, %v21_v2   ;;  %v27_v5 = vsel %vm23_vm0, %v20_v1, -inf  ;;  %v22_v6 = vld [vmem:[%s207_s1 + $0x8] sm:$0xff]  ;;  %v46_v11 = vlaneseq  ;;  %vm16_vm3 = vcmask 7168   ;;  %v153_v25 = vmov 0.0  }
   0x4   :  { %17 = vst.msk [vmem:[#allocation2] sm:$0xff] %vm16_vm3, %v153_v25  ;;  %18 = vst.msk [vmem:[#allocation2 + $0x8] sm:$0xff] %vm16_vm3, %v153_v25  ;;  %s140_s18 = scalar_lea.hbm %s208_s2, 16 }
   0x5   :  { %v47_v15 = vand.u32 127, %v46_v11  ;;  %p141_p0 = scmp.ne.s32.totalorder %s208_s2, %s140_s18  ;;  %p144_p1 = scmp.lt.u32.totalorder %s140_s18, %s208_s2 }
   0x7   :  { %28 = vmax.xlane.f32.xlu0 %v27_v5  ;;  %52 = vperm.xlu1 %126, %v22_v6   ;;  %p146_p2 = pnand %p144_p1, %p141_p0 }
   0xb   :  { %v82_v47 = vld [vmem:[#allocation2] sm:$0xff]  ;;  %v83_v53 = vld [vmem:[#allocation2 + $0x8] sm:$0xff] }
  0x82   :  { %v50_v14 = vpop.permute.xlu1 %49 }
  0x83   :  { %vm54_vm1 = vcmp.eq.s32.totalorder %v47_v15, %v50_v14 }
  0x84   :  { %v56_v18 = vsel %vm54_vm1, %v19_v0, 0.0 }
  0x85   :  { %v58_v20 = vsel %vm23_vm0, %v56_v18, 0.0 }
  0x86   :  { %v53_v16 = vpop.permute.xlu1 %52 }
  0x87   :  { %vm55_vm2 = vcmp.eq.s32.totalorder %v47_v15, %v53_v16 }
  0x88   :  { %v57_v22 = vsel %vm55_vm2, %v20_v1, 0.0 }
  0x89   :  { %v61_v24 = vsel %vm23_vm0, %v57_v22, 0.0 }
  0x90   :  { %v26_v7 = vpop.xlane.xlu0 %25 }
  0x91   :  { %v30_v8 = vsub.f32 %v19_v0, %v26_v7 }
  0x93   :  { %v32_v9 = vmul.f32 1.442695, %v30_v8 }
  0x94   :  { %v29_v10 = vpop.xlane.xlu0 %28 }
  0x95   :  { %128 = vpow2.f32 %v32_v9  ;;  %v31_v12 = vsub.f32 %v20_v1, %v29_v10 }
  0x97   :  { %v34_v13 = vmul.f32 1.442695, %v31_v12 }
  0x99   :  { %130 = vpow2.f32 %v34_v13 }
  0x9f   :  { %v129_v17 = vpop.eup %128 }
  0xa0   :  { %v36_v19 = vsel %vm23_vm0, %v129_v17, 0.0 }
  0xa1   :  { %37 = vadd.xlane.f32.xlu0 %v36_v19 }
  0xa3   :  { %v131_v21 = vpop.eup %130 }
  0xa4   :  { %v39_v23 = vsel %vm23_vm0, %v131_v21, 0.0 }
  0xa5   :  { %59 = vadd.xlane.f32.xlu0 %v58_v20  ;;  %40 = vadd.xlane.f32.xlu1 %v39_v23 }
  0xa9   :  { %62 = vadd.xlane.f32.xlu0 %v61_v24 }
 0x12e   :  { %v38_v26 = vpop.xlane.xlu0 %37 }
 0x12f   :  { %132 = vlog2.f32 %v38_v26 }
 0x132   :  { %v41_v27 = vpop.xlane.xlu1 %40  ;;  %v60_v28 = vpop.xlane.xlu0 %59 }
 0x133   :  { %134 = vlog2.f32 %v41_v27  ;;  %v64_v31 = vsub.f32 %v60_v28, %v26_v7 }
 0x136   :  { %v63_v32 = vpop.xlane.xlu0 %62 }
 0x137   :  { %v65_v37 = vsub.f32 %v63_v32, %v29_v10 }
 0x139   :  { %v133_v29 = vpop.eup %132 }
 0x13a   :  { %v43_v30 = vmul.f32 0.6931472, %v133_v29 }
 0x13c   :  { %v66_v33 = vsub.f32 %v64_v31, %v43_v30 }
 0x13d   :  { %v135_v34 = vpop.eup %134 }
 0x13e   :  { %v45_v35 = vmul.f32 0.6931472, %v135_v34  ;;  %v70_v36 = vmul.f32 1.442695, %v66_v33  ;;  %v68_v44 = vsub.f32 0.0, %v66_v33 }
 0x140   :  { %136 = vpow2.f32 %v70_v36  ;;  %v67_v38 = vsub.f32 %v65_v37, %v45_v35 }
 0x142   :  { %v72_v39 = vmul.f32 1.442695, %v67_v38  ;;  %v69_v51 = vsub.f32 0.0, %v67_v38 }
 0x144   :  { %138 = vpow2.f32 %v72_v39 }
 0x14a   :  { %v137_v40 = vpop.eup %136 }
 0x14b   :  { %v74_v41 = vsub.f32 1.0, %v137_v40 }
 0x14d   :  { %v76_v42 = vmax.f32 %v74_v41, 0.0 }
 0x14e   :  { %v139_v43 = vpop.eup %138 }
 0x14f   :  { %v78_v45 = vmul.f32 %v76_v42, %v76_v42  ;;  %v75_v46 = vsub.f32 1.0, %v139_v43 }
 0x151   :  { %v80_v48 = vmul.f32 %v78_v45, %v68_v44  ;;  %v77_v49 = vmax.f32 %v75_v46, 0.0 }
 0x153   :  { %v84_v50 = vadd.f32 %v82_v47, %v80_v48  ;;  %v79_v52 = vmul.f32 %v77_v49, %v77_v49 }
 0x155   :  { %87 = vst.msk [vmem:[#allocation2] sm:$0xff] %vm16_vm3, %v84_v50  ;;  %v81_v54 = vmul.f32 %v79_v52, %v69_v51 }
 0x157   :  { %v85_v55 = vadd.f32 %v83_v53, %v81_v54 }
 0x159   :  { %88 = vst.msk [vmem:[#allocation2 + $0x8] sm:$0xff] %vm16_vm3, %v85_v55 }
 0x15c   :  { %v92_v56 = vld [vmem:[#allocation2] sm:$0xff] }
 0x15d   :  { %v94_v58 = vsel %vm16_vm3, %v92_v56, 0.0 }
 0x160   :  { %v93_v57 = vld [vmem:[#allocation2 + $0x8] sm:$0xff] }
 0x161   :  { %v95_v59 = vsel %vm16_vm3, %v93_v57, 0.0 }
 0x162   :  { %v96_v60 = vadd.f32 %v95_v59, %v94_v58 }
 0x164   :  { %97 = vadd.xlane.f32.xlu0 %v96_v60 }
 0x1f1   :  { %v98_v61 = vpop.xlane.xlu0 %97 }
 0x1f2   :  { %v99_v62 = vrot.slane %v98_v61, 4 }
 0x1f4   :  { %v100_v63 = vadd.f32 %v99_v62, %v98_v61 }
 0x1f6   :  { %v101_v0 = vrot.slane %v100_v63, 2 }
 0x1f8   :  { %v102_v1 = vadd.f32 %v101_v0, %v100_v63 }
 0x1fa   :  { %v103_v2 = vrot.slane %v102_v1, 1 }
 0x1fc   :  { %v104_v3 = vadd.f32 %v103_v2, %v102_v1 }
 0x1fe   :  { %121 = vpush %v104_v3 }
 0x22f   :  { %s122_s0 = spop %121 }
 0x230   :  { %107 = sst [smem:[#allocation3]] %s122_s0 }
 0x231   :  { %149 = shalt.err (!%p146_p2)
}
 0x232   :  { %s154_s23 = smov [#allocation3]  }
 0x233   :  { %115 = dma.smem_to_hbm %s154_s23, 16, %s208_s2, [#allocation4]  }
 0x234   :  { %150 = dma.done.wait [#allocation4], 16  }
 0x235   :  { %151 = vsyncadd [#allocation4], 4294967280 }
 0x236   :  { %119 = sfence }
 0x237   :  { %120 = vsyncpa [#allocation4], 1 }

</bundles_post_ra>
